<compile_context>
chip_gen: v6e
topology: v6e:2x2x1
jax: 0.10.0
libtpu: 0.0.40
codegen_flags: <defaults>
</compile_context>

<pallas_src>
import jax
import jax.numpy as jnp
from jax.experimental import pallas as pl
from jax.experimental.pallas import tpu as pltpu


def _rope_kernel(x_ref, tab_ref, o_ref):
    # x_ref / o_ref : (tB, tS, D) tile.
    # tab_ref       : (tS, D) f32 packed table [cos0, sin0, cos1, sin1, ...].
    tab = tab_ref[...]
    d = tab.shape[-1]

    # (1, D) lane-parity mask; broadcast along sublanes inside jnp.where.
    lane = jax.lax.broadcasted_iota(jnp.int32, (1, d), 1)
    even = (lane & 1) == 0

    # Un-pack the interleaved [cos, sin] table into per-lane duplicated cos / sin
    # with lane rotations (XLU) + parity select.  Wrap-around lanes are discarded
    # by the select (roll(shift=1) wraps at lane 0, used only on odd lanes;
    # roll(shift=d-1) wraps at lane d-1, used only on even lanes).
    cos = jnp.where(even, tab, pltpu.roll(tab, shift=1, axis=1))      # c0,c0,c1,c1,...
    sin = jnp.where(even, pltpu.roll(tab, shift=d - 1, axis=1), tab)  # s0,s0,s1,s1,...

    # Static, small (<=16) loop over the batch rows of this tile; each row is a
    # lane-dense (tS, D) slab so all rolls stay rank-2.
    for i in range(x_ref.shape[0]):
        x = x_ref[i].astype(jnp.float32)                              # (tS, D)
        # signed pair partner: [-x1, +x0, -x3, +x2, ...]
        partner = jnp.where(even,
                            -pltpu.roll(x, shift=d - 1, axis=1),      # y[j] = x[j+1]
                            pltpu.roll(x, shift=1, axis=1))           # y[j] = x[j-1]
        o_ref[i] = (x * cos + partner * sin).astype(o_ref.dtype)


_TABLE_CACHE = {}


def _rope_table(S, D):
    """Packed f32 table tab[s, 2i] = cos(angle_{s,i}), tab[s, 2i+1] = sin(angle_{s,i}).

    Built once per (S, D) (all inputs are Python ints, so this is concrete even under
    an outer jit) and cached, like the PyTorch module's registered buffer."""
    key = (S, D)
    tab = _TABLE_CACHE.get(key)
    if tab is None:
        tok = jnp.arange(S, dtype=jnp.float32)[:, None]           # (S, 1)
        pos = jnp.arange(0, D, 2, dtype=jnp.float32)[None, :]     # (1, D//2)
        theta = 10000.0 ** (-2.0 * pos / D)
        angles = tok * theta                                       # (S, D//2)
        tab = jnp.stack([jnp.cos(angles), jnp.sin(angles)], axis=-1).reshape(S, D)
        _TABLE_CACHE[key] = tab
    return tab


def _choose_tiles(B, S, D, x_itemsize, out_itemsize):
    """Pick (batch_tile, seq_tile) within a ~10 MiB single-buffer budget.

    seq tile is a multiple of the sublane packing (8 f32 / 16 bf16) or the full
    sequence extent; no divisibility-of-S requirement (ragged last block is masked).
    When the whole sequence fits, grow the batch tile so per-step DMAs stay multi-MiB
    (per-step overhead ~0.35us)."""
    sub = {4: 8, 2: 16, 1: 32}.get(x_itemsize, 8)
    budget = 10 * 1024 * 1024
    row_bytes = D * (x_itemsize + out_itemsize + 4)   # x + out + f32 packed table per row
    max_rows = min(2048, max(sub, budget // row_bytes))
    if S <= max_rows:
        tS = S                                        # full-extent block: any S is legal
        tB = max(1, min(B, max_rows // max(S, 1), 16))
    else:
        tS = max(sub, (max_rows // sub) * sub)
        tB = 1
    return tB, tS


def rotary_embeddings(x, *, seq_tile=None, batch_tile=None):
    """Apply interleaved-pair RoPE to x of shape (B, S, D); matches the PyTorch module."""
    B, S, D = x.shape
    assert D % 2 == 0, "embedding dim must be even"

    # torch promotion: (bf16/f16/f32 x) * (f32 angles) -> f32 output, f32 math.
    out_dtype = jnp.promote_types(x.dtype, jnp.float32)
    tab = _rope_table(S, D)

    tB, tS = _choose_tiles(B, S, D, x.dtype.itemsize, jnp.dtype(out_dtype).itemsize)
    if seq_tile is not None:
        tS = seq_tile
    if batch_tile is not None:
        tB = batch_tile
    nS = pl.cdiv(S, tS)
    nB = pl.cdiv(B, tB)

    x_spec = pl.BlockSpec((tB, tS, D), lambda s, b: (b, s, 0))
    tab_spec = pl.BlockSpec((tS, D), lambda s, b: (s, 0))   # block idx constant across b

    # v7x megacore: split cores on the sequence axis when it has >1 block so each
    # core keeps the table-DMA elision along the (inner) batch axis.
    dims = ("parallel", "arbitrary") if nS > 1 else ("parallel", "parallel")

    return pl.pallas_call(
        _rope_kernel,
        out_shape=jax.ShapeDtypeStruct((B, S, D), out_dtype),
        grid_spec=pltpu.PrefetchScalarGridSpec(
            num_scalar_prefetch=0,
            grid=(nS, nB),                  # batch innermost: table isn't re-DMA'd per b
            in_specs=[x_spec, tab_spec],
            out_specs=x_spec,
        ),
        compiler_params=pltpu.CompilerParams(
            dimension_semantics=dims,
            vmem_limit_bytes=32 * 1024 * 1024,
        ),
    )(x, tab)


def _rope_reference(x):
    """Pure-JAX reference mirroring the PyTorch apply_rope exactly (f32 math)."""
    B, S, D = x.shape
    token_idx = jnp.arange(S, dtype=jnp.float32)[:, None]
    positions = jnp.arange(0, D, 2, dtype=jnp.float32)[None, :]
    theta = 10000.0 ** (-2.0 * positions / D)
    angles = token_idx * theta                      # (S, D//2)
    xr = x.astype(jnp.float32).reshape(B, S, D // 2, 2)
    c = jnp.cos(angles)
    s = jnp.sin(angles)
    out = jnp.stack(
        [xr[..., 0] * c - xr[..., 1] * s,
         xr[..., 1] * c + xr[..., 0] * s],
        axis=-1,
    )
    return out.reshape(B, S, D)


if __name__ == "__main__":
    # Small shapes consistent with the module's (batch, block_size, embeddings_dims).
    B, S, D = 2, 16, 128
    x = jax.random.normal(jax.random.PRNGKey(0), (B, S, D), dtype=jnp.float32)
    out = jax.block_until_ready(rotary_embeddings(x))
    ref = _rope_reference(x)
    assert out.shape == (B, S, D) and out.dtype == jnp.float32
    assert jnp.allclose(out, ref, atol=1e-5, rtol=1e-5)

    # Multi-vreg lane rolls (the module's real embeddings_dims = 512).
    x2 = jax.random.normal(jax.random.PRNGKey(1), (2, 16, 512), dtype=jnp.float32)
    out2 = jax.block_until_ready(rotary_embeddings(x2))
    assert jnp.allclose(out2, _rope_reference(x2), atol=1e-5, rtol=1e-5)

    # bf16 activations (f32 math / f32 output, matching torch promotion).
    x3 = jax.random.normal(jax.random.PRNGKey(2), (2, 16, 128)).astype(jnp.bfloat16)
    out3 = jax.block_until_ready(rotary_embeddings(x3))
    assert out3.dtype == jnp.float32
    assert jnp.allclose(out3, _rope_reference(x3), atol=1e-5, rtol=1e-5)

    # Ragged tiling: S not a multiple of the seq tile and B not a multiple of the
    # batch tile -> exercises Pallas edge masking on partial blocks.
    x4 = jax.random.normal(jax.random.PRNGKey(3), (3, 20, 128), dtype=jnp.float32)
    out4 = jax.block_until_ready(rotary_embeddings(x4, seq_tile=8, batch_tile=2))
    assert jnp.allclose(out4, _rope_reference(x4), atol=1e-5, rtol=1e-5)

    print("KERNEL_OK")
</pallas_src>

<mosaic_0001>
module attributes {stable_mosaic.version = 11 : i64} {
  func.func @_rope_kernel(%arg0: i32, %arg1: i32, %arg2: memref<2x16x128xf32, #tpu.memory_space<vmem>>, %arg3: memref<16x128xf32, #tpu.memory_space<vmem>>, %arg4: memref<2x16x128xf32, #tpu.memory_space<vmem>>) attributes {dimension_semantics = [#tpu.dimension_semantics<parallel>, #tpu.dimension_semantics<parallel>], iteration_bounds = array<i64: 1, 1>, scalar_prefetch = 0 : i64, scratch_operands = 0 : i64, tpu.core_type = #tpu.core_type<tc>, window_params = [{transform_indices = @transform_0, window_bounds = array<i64: 2, 16, 128>}, {transform_indices = @transform_1, window_bounds = array<i64: 16, 128>}, {transform_indices = @transform_2, window_bounds = array<i64: 2, 16, 128>}]} {
    %c0 = arith.constant 0 : index
    %c0_0 = arith.constant 0 : index
    %0 = vector.load %arg3[%c0, %c0_0] : memref<16x128xf32, #tpu.memory_space<vmem>>, vector<16x128xf32>
    %1 = tpu.iota {dimensions = array<i32: 1>} : vector<1x128xi32>
    %c1_i32 = arith.constant 1 : i32
    %2 = vector.broadcast %c1_i32 : i32 to vector<1x128xi32>
    %3 = arith.andi %1, %2 : vector<1x128xi32>
    %c0_i32 = arith.constant 0 : i32
    %4 = vector.broadcast %c0_i32 : i32 to vector<1x128xi32>
    %5 = arith.cmpi eq, %3, %4 : vector<1x128xi32>
    %c1_i32_1 = arith.constant 1 : i32
    %6 = tpu.dynamic_rotate %0 by %c1_i32_1 dim 1 : vector<16x128xf32>, i32 -> vector<16x128xf32>
    %7 = vector.shape_cast %5 : vector<1x128xi1> to vector<1x128xi1>
    %8 = vector.broadcast %7 : vector<1x128xi1> to vector<16x128xi1>
    %9 = arith.select %8, %0, %6 : vector<16x128xi1>, vector<16x128xf32>
    %c127_i32 = arith.constant 127 : i32
    %10 = tpu.dynamic_rotate %0 by %c127_i32 dim 1 : vector<16x128xf32>, i32 -> vector<16x128xf32>
    %11 = vector.shape_cast %5 : vector<1x128xi1> to vector<1x128xi1>
    %12 = vector.broadcast %11 : vector<1x128xi1> to vector<16x128xi1>
    %13 = arith.select %12, %10, %0 : vector<16x128xi1>, vector<16x128xf32>
    %c0_2 = arith.constant 0 : index
    %c0_3 = arith.constant 0 : index
    %c0_4 = arith.constant 0 : index
    %14 = vector.load %arg2[%c0_2, %c0_3, %c0_4] : memref<2x16x128xf32, #tpu.memory_space<vmem>>, vector<1x16x128xf32>
    %15 = vector.shape_cast %14 : vector<1x16x128xf32> to vector<16x128xf32>
    %c127_i32_5 = arith.constant 127 : i32
    %16 = tpu.dynamic_rotate %15 by %c127_i32_5 dim 1 : vector<16x128xf32>, i32 -> vector<16x128xf32>
    %cst = arith.constant 0.000000e+00 : f32
    %17 = vector.broadcast %cst : f32 to vector<16x128xf32>
    %18 = arith.subf %17, %16 : vector<16x128xf32>
    %c1_i32_6 = arith.constant 1 : i32
    %19 = tpu.dynamic_rotate %15 by %c1_i32_6 dim 1 : vector<16x128xf32>, i32 -> vector<16x128xf32>
    %20 = vector.shape_cast %5 : vector<1x128xi1> to vector<1x128xi1>
    %21 = vector.broadcast %20 : vector<1x128xi1> to vector<16x128xi1>
    %22 = arith.select %21, %18, %19 : vector<16x128xi1>, vector<16x128xf32>
    %23 = arith.mulf %15, %9 : vector<16x128xf32>
    %24 = arith.mulf %22, %13 : vector<16x128xf32>
    %25 = arith.addf %23, %24 : vector<16x128xf32>
    %c0_7 = arith.constant 0 : index
    %c0_8 = arith.constant 0 : index
    %c0_9 = arith.constant 0 : index
    %26 = vector.load %arg4[%c0_7, %c0_8, %c0_9] : memref<2x16x128xf32, #tpu.memory_space<vmem>>, vector<1x16x128xf32>
    %27 = vector.shape_cast %26 : vector<1x16x128xf32> to vector<16x128xf32>
    %28 = vector.shape_cast %25 : vector<16x128xf32> to vector<1x16x128xf32>
    tpu.vector_store %arg4[%c0_7, %c0_8, %c0_9], %28 {strides = array<i32>} : memref<2x16x128xf32, #tpu.memory_space<vmem>>, vector<1x16x128xf32>,
    %c1 = arith.constant 1 : index
    %c0_10 = arith.constant 0 : index
    %c0_11 = arith.constant 0 : index
    %29 = vector.load %arg2[%c1, %c0_10, %c0_11] : memref<2x16x128xf32, #tpu.memory_space<vmem>>, vector<1x16x128xf32>
    %30 = vector.shape_cast %29 : vector<1x16x128xf32> to vector<16x128xf32>
    %c127_i32_12 = arith.constant 127 : i32
    %31 = tpu.dynamic_rotate %30 by %c127_i32_12 dim 1 : vector<16x128xf32>, i32 -> vector<16x128xf32>
    %cst_13 = arith.constant 0.000000e+00 : f32
    %32 = vector.broadcast %cst_13 : f32 to vector<16x128xf32>
    %33 = arith.subf %32, %31 : vector<16x128xf32>
    %c1_i32_14 = arith.constant 1 : i32
    %34 = tpu.dynamic_rotate %30 by %c1_i32_14 dim 1 : vector<16x128xf32>, i32 -> vector<16x128xf32>
    %35 = vector.shape_cast %5 : vector<1x128xi1> to vector<1x128xi1>
    %36 = vector.broadcast %35 : vector<1x128xi1> to vector<16x128xi1>
    %37 = arith.select %36, %33, %34 : vector<16x128xi1>, vector<16x128xf32>
    %38 = arith.mulf %30, %9 : vector<16x128xf32>
    %39 = arith.mulf %37, %13 : vector<16x128xf32>
    %40 = arith.addf %38, %39 : vector<16x128xf32>
    %c1_15 = arith.constant 1 : index
    %c0_16 = arith.constant 0 : index
    %c0_17 = arith.constant 0 : index
    %41 = vector.load %arg4[%c1_15, %c0_16, %c0_17] : memref<2x16x128xf32, #tpu.memory_space<vmem>>, vector<1x16x128xf32>
    %42 = vector.shape_cast %41 : vector<1x16x128xf32> to vector<16x128xf32>
    %43 = vector.shape_cast %40 : vector<16x128xf32> to vector<1x16x128xf32>
    tpu.vector_store %arg4[%c1_15, %c0_16, %c0_17], %43 {strides = array<i32>} : memref<2x16x128xf32, #tpu.memory_space<vmem>>, vector<1x16x128xf32>,
    return
  }
  func.func @transform_0(%arg0: i32, %arg1: i32) -> (i32, i32, i32) {
    %c0_i32 = arith.constant 0 : i32
    %c0_i32_0 = arith.constant 0 : i32
    return %arg1, %arg0, %c0_i32 : i32, i32, i32
  }
  func.func @transform_1(%arg0: i32, %arg1: i32) -> (i32, i32) {
    %c0_i32 = arith.constant 0 : i32
    %c0_i32_0 = arith.constant 0 : i32
    return %arg0, %c0_i32 : i32, i32
  }
  func.func @transform_2(%arg0: i32, %arg1: i32) -> (i32, i32, i32) {
    %c0_i32 = arith.constant 0 : i32
    %c0_i32_0 = arith.constant 0 : i32
    return %arg1, %arg0, %c0_i32 : i32, i32, i32
  }
}

</mosaic_0001>

<bundles_post_ra>
// kernel: tpu_custom_call.1
= control target key start
LH: loop header
LB: loop body
LE: loop exit
PB: predicated region body
PF: predicated region fallthrough
CT: control target
= control target key end

     0   :  { %7 = vsyncpa [#allocation3], 0  ;;  %s257_s0 = inlined_call_operand.hbm [shape: f32[2,16,128], index: 0, kind: input, shape index: {}]   ;;  %s258_s1 = inlined_call_operand.hbm [shape: f32[16,128], index: 1, kind: input, shape index: {}]   ;;  %s259_s2 = inlined_call_operand.hbm [shape: f32[2,16,128], index: 2, kind: output, shape index: {}]  }
   0x1   :  { %8 = vsyncpa [#allocation6], 0 }
   0x2   :  { %9 = vsyncpa [#allocation4], 0  ;;  %s197_s9 = smov [#allocation2]  }
   0x3   :  { %s15_s10 = sshll.u32 %s197_s9, 4  ;;  %s16_s10 = int_to_ptr.vmem [resolvable:$true] %s15_s10 }
   0x4   :  { %s139_s11 = scalar_lea.vmem %s16_s10, 512  ;;  %p144_p1 = scmp.lt.s32.totalorder %s16_s10, %s16_s10 }
   0x5   :  { %p140_p0 = scmp.ne.s32.totalorder %s16_s10, %s139_s11  ;;  %p145_p2 = scmp.lt.s32.totalorder %s139_s11, %s139_s11 }
   0x7   :  { %p146_p3 = por %p145_p2, %p144_p1 }
   0x9   :  { %p147_p4 = pnand %p146_p3, %p140_p0 }
   0xb   :  { %150 = shalt.err (!%p147_p4)
}
   0xc   :  { %s198_s12 = smov 128   ;;  %s199_s13 = smov 8  }
   0xd   :  { %21 = dma.hbm_to_vmem [thread:$0]  %s257_s0, 512, %s16_s10, [#allocation3], %s198_s12, %s198_s12, %s199_s13  }
   0xe   :  { %s200_s16 = smov [#allocation5]  }
   0xf   :  { %s27_s17 = sshll.u32 %s200_s16, 4  ;;  %s28_s17 = int_to_ptr.vmem [resolvable:$true] %s27_s17 }
  0x10   :  { %s159_s18 = scalar_lea.vmem %s28_s17, 256  ;;  %p164_p6 = scmp.lt.s32.totalorder %s28_s17, %s28_s17 }
  0x11   :  { %p160_p5 = scmp.ne.s32.totalorder %s28_s17, %s159_s18  ;;  %p165_p7 = scmp.lt.s32.totalorder %s159_s18, %s159_s18 }
  0x13   :  { %p166_p8 = por %p165_p7, %p164_p6 }
  0x15   :  { %p167_p9 = pnand %p166_p8, %p160_p5 }
  0x17   :  { %170 = shalt.err (!%p167_p9)
}
  0x18   :  { %33 = dma.hbm_to_vmem [thread:$0]  %s258_s1, 256, %s28_s17, [#allocation6], %s198_s12, %s198_s12, %s199_s13  }
  0x19   :  { %191 = dma.done.wait [#allocation3], 512  }
  0x1a   :  { %192 = vsyncadd [#allocation3], 4294966784 }
  0x1b   :  { %193 = dma.done.wait [#allocation6], 256  }
  0x1c   :  { %194 = vsyncadd [#allocation6], 4294967040  ;;  %v83_v0 = vld [vmem:[#allocation2 + $0x10] sm:$0xff]  ;;  %v60_v1 = vld [vmem:[#allocation2] sm:$0xff]  ;;  %s201_s0 = smov 127   ;;  %s202_s21 = smov 1   ;;  %v42_v8 = vlaneseq }
  0x1d   :  { %85 = vrot.lane.b32.xlu1 %v83_v0, %s201_s0  ;;  %62 = vrot.lane.b32.xlu0 %v60_v1, %s201_s0  ;;  %v84_v2 = vld [vmem:[#allocation2 + $0x18] sm:$0xff]  ;;  %v61_v3 = vld [vmem:[#allocation2 + $0x8] sm:$0xff]  ;;  %v40_v5 = vld [vmem:[#allocation5] sm:$0xff]  ;;  %s203_s1 = smov [#allocation7]  }
  0x1e   :  { %v41_v4 = vld [vmem:[#allocation5 + $0x8] sm:$0xff]  ;;  %v43_v11 = vand.u32 127, %v42_v8  ;;  %s111_s22 = sshll.u32 %s203_s1, 4  ;;  %s112_s22 = int_to_ptr.vmem [resolvable:$true] %s111_s22 }
  0x1f   :  { %s171_s23 = scalar_lea.vmem %s112_s22, 512  ;;  %p176_p11 = scmp.lt.s32.totalorder %s112_s22, %s112_s22 }
  0x20   :  { %v44_v12 = vand.u32 1, %v43_v11  ;;  %p172_p10 = scmp.ne.s32.totalorder %s112_s22, %s171_s23  ;;  %p177_p12 = scmp.lt.s32.totalorder %s171_s23, %s171_s23 }
  0x21   :  { %87 = vrot.lane.b32.xlu1 %v84_v2, %s201_s0  ;;  %64 = vrot.lane.b32.xlu0 %v61_v3, %s201_s0 }
  0x22   :  { %vm231_vm0 = vcmp.eq.s32.totalorder %v44_v12, 0  ;;  %p178_p13 = por %p177_p12, %p176_p11 }
  0x24   :  { %p179_p0 = pnand %p178_p13, %p172_p10 }
  0x25   :  { %48 = vrot.lane.b32.xlu1 %v41_v4, %s202_s21  ;;  %46 = vrot.lane.b32.xlu0 %v40_v5, %s202_s21 }
  0x29   :  { %56 = vrot.lane.b32.xlu1 %v41_v4, %s201_s0  ;;  %54 = vrot.lane.b32.xlu0 %v40_v5, %s201_s0 }
  0x2d   :  { %70 = vrot.lane.b32.xlu1 %v61_v3, %s202_s21  ;;  %68 = vrot.lane.b32.xlu0 %v60_v1, %s202_s21 }
  0x31   :  { %93 = vrot.lane.b32.xlu1 %v84_v2, %s202_s21  ;;  %91 = vrot.lane.b32.xlu0 %v83_v0, %s202_s21 }
  0x8f   :  { %v86_v6 = vpop.permute.xlu1 %85  ;;  %v63_v7 = vpop.permute.xlu0 %62 }
  0x90   :  { %v66_v18 = vsub.f32 0.0, %v63_v7  ;;  %v89_v32 = vsub.f32 0.0, %v86_v6 }
  0x93   :  { %v88_v9 = vpop.permute.xlu1 %87  ;;  %v65_v10 = vpop.permute.xlu0 %64 }
  0x94   :  { %v67_v19 = vsub.f32 0.0, %v65_v10  ;;  %v90_v33 = vsub.f32 0.0, %v88_v9 }
  0x97   :  { %v49_v13 = vpop.permute.xlu1 %48  ;;  %v47_v14 = vpop.permute.xlu0 %46 }
  0x98   :  { %v53_v20 = vsel %vm231_vm0, %v41_v4, %v49_v13  ;;  %v52_v21 = vsel %vm231_vm0, %v40_v5, %v47_v14 }
  0x99   :  { %v75_v28 = vmul.f32 %v61_v3, %v53_v20  ;;  %v74_v29 = vmul.f32 %v60_v1, %v52_v21  ;;  %v98_v40 = vmul.f32 %v84_v2, %v53_v20  ;;  %v97_v41 = vmul.f32 %v83_v0, %v52_v21 }
  0x9b   :  { %v57_v16 = vpop.permute.xlu1 %56  ;;  %v55_v17 = vpop.permute.xlu0 %54 }
  0x9c   :  { %v59_v24 = vsel %vm231_vm0, %v57_v16, %v41_v4  ;;  %v58_v25 = vsel %vm231_vm0, %v55_v17, %v40_v5 }
  0x9f   :  { %v71_v22 = vpop.permute.xlu1 %70  ;;  %v69_v23 = vpop.permute.xlu0 %68 }
  0xa0   :  { %v73_v26 = vsel %vm231_vm0, %v67_v19, %v71_v22  ;;  %v72_v27 = vsel %vm231_vm0, %v66_v18, %v69_v23 }
  0xa1   :  { %v77_v30 = vmul.f32 %v73_v26, %v59_v24  ;;  %v76_v31 = vmul.f32 %v72_v27, %v58_v25 }
  0xa3   :  { %v79_v34 = vadd.f32 %v77_v30, %v75_v28  ;;  %v78_v35 = vadd.f32 %v76_v31, %v74_v29  ;;  %v94_v36 = vpop.permute.xlu1 %93  ;;  %v92_v37 = vpop.permute.xlu0 %91 }
  0xa4   :  { %v96_v38 = vsel %vm231_vm0, %v90_v33, %v94_v36  ;;  %v95_v39 = vsel %vm231_vm0, %v89_v32, %v92_v37 }
  0xa5   :  { %81 = vst [vmem:[#allocation7 + $0x8] sm:$0xff] %v79_v34  ;;  %80 = vst [vmem:[#allocation7] sm:$0xff] %v78_v35  ;;  %v100_v42 = vmul.f32 %v96_v38, %v59_v24  ;;  %v99_v43 = vmul.f32 %v95_v39, %v58_v25 }
  0xa7   :  { %v102_v44 = vadd.f32 %v100_v42, %v98_v40  ;;  %v101_v45 = vadd.f32 %v99_v43, %v97_v41 }
  0xa9   :  { %105 = vst [vmem:[#allocation7 + $0x18] sm:$0xff] %v102_v44  ;;  %104 = vst [vmem:[#allocation7 + $0x10] sm:$0xff] %v101_v45 }
  0xaa   :  { %182 = shalt.err (!%p179_p0)
}
  0xab   :  { %117 = dma.vmem_to_hbm [thread:$0]  %s112_s22, 512, %s259_s2, [#allocation4], %s198_s12, %s198_s12, %s199_s13  }
  0xac   :  { %195 = dma.done.wait [#allocation4], 512  }
  0xad   :  { %196 = vsyncadd [#allocation4], 4294966784 }
  0xae   :  { %121 = vsyncpa [#allocation3], 1 }
  0xaf   :  { %122 = vsyncpa [#allocation6], 1 }
  0xb0   :  { %123 = vsyncpa [#allocation4], 1 }

</bundles_post_ra>
